<compile_context>
chip_gen: v7x
topology: tpu7x:2x2x1
jax: 0.10.0
libtpu: 0.0.40
codegen_flags: <defaults>
</compile_context>

<pallas_src>
import jax
import jax.numpy as jnp
from jax.experimental import pallas as pl
from jax.experimental.pallas import tpu as pltpu

HIDDEN = 64


def _round_up(n, m):
    return ((n + m - 1) // m) * m


def _cdiv(a, b):
    return (a + b - 1) // b


def dqn_kernel(x_ref, w1_ref, b1_ref, w2_ref, b2_ref, w3_ref, b3_ref, o_ref):
    # One batch tile per grid step; all three layers fused, intermediates live in vregs.
    x = x_ref[...].astype(w1_ref.dtype)                                       # f32 -> bf16 in-kernel
    h1 = jnp.dot(x, w1_ref[...], preferred_element_type=jnp.float32) + b1_ref[...]
    h1 = jnp.maximum(h1, 0.0).astype(w2_ref.dtype)                            # (tb, 64) bf16
    h2 = jnp.dot(h1, w2_ref[...], preferred_element_type=jnp.float32) + b2_ref[...]
    h2 = jnp.maximum(h2, 0.0).astype(w3_ref.dtype)                            # (tb, 64) bf16
    out = jnp.dot(h2, w3_ref[...], preferred_element_type=jnp.float32) + b3_ref[...]
    o_ref[...] = out.astype(o_ref.dtype)                                      # (tb, 8) f32


def prepare_params(params, dtype=jnp.bfloat16):
    """One-time prep: transpose to (in, out), pad output lanes to a multiple of 8, cast to bf16.

    `params` uses PyTorch nn.Linear convention: W is (out_features, in_features).
    """
    action_size, hidden = params["w3"].shape
    a_pad = _round_up(action_size, 8)                         # 5 -> 8 (was 128)

    w1t = params["w1"].T.astype(dtype)                        # (S, 64)
    w2t = params["w2"].T.astype(dtype)                        # (64, 64)
    w3t = jnp.zeros((hidden, a_pad), dtype).at[:, :action_size].set(
        params["w3"].T.astype(dtype))                         # (64, 8), zero-padded lanes

    b1 = params["b1"][None, :].astype(jnp.float32)            # (1, 64)
    b2 = params["b2"][None, :].astype(jnp.float32)            # (1, 64)
    b3 = jnp.zeros((1, a_pad), jnp.float32).at[:, :action_size].set(
        params["b3"].astype(jnp.float32))                     # (1, 8)

    return {"w1t": w1t, "b1": b1, "w2t": w2t, "b2": b2, "w3t": w3t, "b3": b3,
            "action_size": action_size}


def dqn_forward(x, prep, tile_b=2048):
    """x: (B, state_size) f32; prep: output of prepare_params. Returns (B, action_size) f32."""
    B, S = x.shape
    A = prep["action_size"]
    a_pad = prep["w3t"].shape[1]

    # Batch tile: as large as possible (amortize per-grid-step overhead), but no larger
    # than ceil(B/2) rounded to 8 sublanes so the "parallel" batch axis gives >=2 grid
    # steps (both v7x TensorCores) whenever B is big enough. No wrapper pad: the ragged
    # last block is masked by Pallas and padded rows never feed a reduction.
    tb = max(8, min(tile_b, _round_up(_cdiv(B, 2), 8)))
    grid = (pl.cdiv(B, tb),)

    def const_spec(arr):
        shape = arr.shape
        return pl.BlockSpec(shape, lambda i: (0,) * len(shape))

    flops = 2 * B * (S * HIDDEN + HIDDEN * HIDDEN + HIDDEN * a_pad)
    bytes_accessed = (
        x.size * x.dtype.itemsize
        + sum(prep[k].size * prep[k].dtype.itemsize
              for k in ("w1t", "b1", "w2t", "b2", "w3t", "b3"))
        + B * a_pad * 4
    )

    out_padded = pl.pallas_call(
        dqn_kernel,
        out_shape=jax.ShapeDtypeStruct((B, a_pad), jnp.float32),
        grid=grid,
        in_specs=[
            pl.BlockSpec((tb, S), lambda i: (i, 0)),          # batch-tiled f32 activations
            const_spec(prep["w1t"]), const_spec(prep["b1"]),  # weights/biases VMEM-resident
            const_spec(prep["w2t"]), const_spec(prep["b2"]),
            const_spec(prep["w3t"]), const_spec(prep["b3"]),
        ],
        out_specs=pl.BlockSpec((tb, a_pad), lambda i: (i, 0)),
        compiler_params=pltpu.CompilerParams(dimension_semantics=("parallel",)),
        cost_estimate=pl.CostEstimate(flops=flops, transcendentals=0,
                                      bytes_accessed=bytes_accessed),
    )(x, prep["w1t"], prep["b1"], prep["w2t"], prep["b2"], prep["w3t"], prep["b3"])

    return out_padded[:, :A]


def init_params(key, state_size, action_size, hidden=HIDDEN):
    """Deterministic synthetic params, PyTorch nn.Linear convention: W is (out, in)."""
    ks = jax.random.split(key, 6)
    scale = lambda fan_in: 1.0 / jnp.sqrt(jnp.float32(fan_in))
    return {
        "w1": jax.random.uniform(ks[0], (hidden, state_size), jnp.float32, -1, 1) * scale(state_size),
        "b1": jax.random.uniform(ks[1], (hidden,), jnp.float32, -1, 1) * scale(state_size),
        "w2": jax.random.uniform(ks[2], (hidden, hidden), jnp.float32, -1, 1) * scale(hidden),
        "b2": jax.random.uniform(ks[3], (hidden,), jnp.float32, -1, 1) * scale(hidden),
        "w3": jax.random.uniform(ks[4], (action_size, hidden), jnp.float32, -1, 1) * scale(hidden),
        "b3": jax.random.uniform(ks[5], (action_size,), jnp.float32, -1, 1) * scale(hidden),
    }


def dqn_ref(x, params):
    h1 = jnp.maximum(x @ params["w1"].T + params["b1"], 0.0)
    h2 = jnp.maximum(h1 @ params["w2"].T + params["b2"], 0.0)
    return h2 @ params["w3"].T + params["b3"]


if __name__ == "__main__":
    key = jax.random.PRNGKey(0)
    k_x, k_p = jax.random.split(key)

    batch = 8
    state_size = 26   # typical turtlebot3 laser-scan state dimensionality
    action_size = 5

    x = jax.random.normal(k_x, (batch, state_size), jnp.float32)
    params = init_params(k_p, state_size, action_size)
    prep = prepare_params(params)           # one-time: transpose + 8-lane pad + bf16 cast

    out = jax.block_until_ready(dqn_forward(x, prep))
    ref = dqn_ref(x, params)
    assert out.shape == (batch, action_size)
    # bf16 weights/activations (f32 accumulation) -> loosen tolerance vs f32 reference
    assert jnp.allclose(out, ref, atol=2e-2, rtol=2e-2), "mismatch vs pure-JAX reference (small batch)"

    # Exercise the multi-step / ragged-last-block path (no wrapper pad, 3 grid steps).
    x_big = jax.random.normal(k_x, (300, state_size), jnp.float32)
    out_big = jax.block_until_ready(dqn_forward(x_big, prep, tile_b=128))
    ref_big = dqn_ref(x_big, params)
    assert out_big.shape == (300, action_size)
    assert jnp.allclose(out_big, ref_big, atol=2e-2, rtol=2e-2), "mismatch vs pure-JAX reference (tiled batch)"

    print("KERNEL_OK")
</pallas_src>

<mosaic_0001>
module attributes {stable_mosaic.version = 11 : i64} {
  func.func @dqn_kernel(%arg0: i32, %arg1: memref<8x26xf32, #tpu.memory_space<vmem>>, %arg2: memref<26x64xbf16, #tpu.memory_space<vmem>>, %arg3: memref<1x64xf32, #tpu.memory_space<vmem>>, %arg4: memref<64x64xbf16, #tpu.memory_space<vmem>>, %arg5: memref<1x64xf32, #tpu.memory_space<vmem>>, %arg6: memref<64x8xbf16, #tpu.memory_space<vmem>>, %arg7: memref<1x8xf32, #tpu.memory_space<vmem>>, %arg8: memref<8x8xf32, #tpu.memory_space<vmem>>) attributes {dimension_semantics = [#tpu.dimension_semantics<parallel>], iteration_bounds = array<i64: 1>, scalar_prefetch = 0 : i64, scratch_operands = 0 : i64, tpu.core_type = #tpu.core_type<tc>, window_params = [{transform_indices = @transform_0, window_bounds = array<i64: 8, 26>}, {pipeline_mode = #tpu.pipeline_mode<synchronous>, transform_indices = @transform_1, window_bounds = array<i64: 26, 64>}, {pipeline_mode = #tpu.pipeline_mode<synchronous>, transform_indices = @transform_2, window_bounds = array<i64: 1, 64>}, {pipeline_mode = #tpu.pipeline_mode<synchronous>, transform_indices = @transform_3, window_bounds = array<i64: 64, 64>}, {pipeline_mode = #tpu.pipeline_mode<synchronous>, transform_indices = @transform_4, window_bounds = array<i64: 1, 64>}, {pipeline_mode = #tpu.pipeline_mode<synchronous>, transform_indices = @transform_5, window_bounds = array<i64: 64, 8>}, {pipeline_mode = #tpu.pipeline_mode<synchronous>, transform_indices = @transform_6, window_bounds = array<i64: 1, 8>}, {transform_indices = @transform_7, window_bounds = array<i64: 8, 8>}]} {
    %c0 = arith.constant 0 : index
    %c0_0 = arith.constant 0 : index
    %0 = vector.load %arg1[%c0, %c0_0] : memref<8x26xf32, #tpu.memory_space<vmem>>, vector<8x26xf32>
    %1 = arith.truncf %0 : vector<8x26xf32> to vector<8x26xbf16>
    %c0_1 = arith.constant 0 : index
    %c0_2 = arith.constant 0 : index
    %2 = vector.load %arg2[%c0_1, %c0_2] : memref<26x64xbf16, #tpu.memory_space<vmem>>, vector<26x64xbf16>
    %cst = arith.constant dense<0.000000e+00> : vector<8x64xf32>
    %3 = tpu.matmul %1, %2, %cst {dimension_numbers = #tpu.dot_dimension_numbers<[1], [0], [0], [1], [0, 0, 1, 1], [], []>} : vector<8x26xbf16>, vector<26x64xbf16>, vector<8x64xf32> -> vector<8x64xf32>
    %c0_3 = arith.constant 0 : index
    %c0_4 = arith.constant 0 : index
    %4 = vector.load %arg3[%c0_3, %c0_4] : memref<1x64xf32, #tpu.memory_space<vmem>>, vector<1x64xf32>
    %5 = vector.broadcast %4 : vector<1x64xf32> to vector<8x64xf32>
    %6 = arith.addf %3, %5 : vector<8x64xf32>
    %cst_5 = arith.constant 0.000000e+00 : f32
    %7 = vector.broadcast %cst_5 : f32 to vector<8x64xf32>
    %8 = arith.maximumf %6, %7 : vector<8x64xf32>
    %9 = arith.truncf %8 : vector<8x64xf32> to vector<8x64xbf16>
    %c0_6 = arith.constant 0 : index
    %c0_7 = arith.constant 0 : index
    %10 = vector.load %arg4[%c0_6, %c0_7] : memref<64x64xbf16, #tpu.memory_space<vmem>>, vector<64x64xbf16>
    %cst_8 = arith.constant dense<0.000000e+00> : vector<8x64xf32>
    %11 = tpu.matmul %9, %10, %cst_8 {dimension_numbers = #tpu.dot_dimension_numbers<[1], [0], [0], [1], [0, 0, 1, 1], [], []>} : vector<8x64xbf16>, vector<64x64xbf16>, vector<8x64xf32> -> vector<8x64xf32>
    %c0_9 = arith.constant 0 : index
    %c0_10 = arith.constant 0 : index
    %12 = vector.load %arg5[%c0_9, %c0_10] : memref<1x64xf32, #tpu.memory_space<vmem>>, vector<1x64xf32>
    %13 = vector.broadcast %12 : vector<1x64xf32> to vector<8x64xf32>
    %14 = arith.addf %11, %13 : vector<8x64xf32>
    %cst_11 = arith.constant 0.000000e+00 : f32
    %15 = vector.broadcast %cst_11 : f32 to vector<8x64xf32>
    %16 = arith.maximumf %14, %15 : vector<8x64xf32>
    %17 = arith.truncf %16 : vector<8x64xf32> to vector<8x64xbf16>
    %c0_12 = arith.constant 0 : index
    %c0_13 = arith.constant 0 : index
    %18 = vector.load %arg6[%c0_12, %c0_13] : memref<64x8xbf16, #tpu.memory_space<vmem>>, vector<64x8xbf16>
    %cst_14 = arith.constant dense<0.000000e+00> : vector<8x8xf32>
    %19 = tpu.matmul %17, %18, %cst_14 {dimension_numbers = #tpu.dot_dimension_numbers<[1], [0], [0], [1], [0, 0, 1, 1], [], []>} : vector<8x64xbf16>, vector<64x8xbf16>, vector<8x8xf32> -> vector<8x8xf32>
    %c0_15 = arith.constant 0 : index
    %c0_16 = arith.constant 0 : index
    %20 = vector.load %arg7[%c0_15, %c0_16] : memref<1x8xf32, #tpu.memory_space<vmem>>, vector<1x8xf32>
    %21 = vector.broadcast %20 : vector<1x8xf32> to vector<8x8xf32>
    %22 = arith.addf %19, %21 : vector<8x8xf32>
    %c0_17 = arith.constant 0 : index
    %c0_18 = arith.constant 0 : index
    %23 = vector.load %arg8[%c0_17, %c0_18] : memref<8x8xf32, #tpu.memory_space<vmem>>, vector<8x8xf32>
    tpu.vector_store %arg8[%c0_17, %c0_18], %22 {strides = array<i32>} : memref<8x8xf32, #tpu.memory_space<vmem>>, vector<8x8xf32>,
    return
  }
  func.func @transform_0(%arg0: i32) -> (i32, i32) {
    %c0_i32 = arith.constant 0 : i32
    %c0_i32_0 = arith.constant 0 : i32
    return %arg0, %c0_i32 : i32, i32
  }
  func.func @transform_1(%arg0: i32) -> (i32, i32) {
    %c0_i32 = arith.constant 0 : i32
    %c0_i32_0 = arith.constant 0 : i32
    %c0_i32_1 = arith.constant 0 : i32
    return %c0_i32, %c0_i32_0 : i32, i32
  }
  func.func @transform_2(%arg0: i32) -> (i32, i32) {
    %c0_i32 = arith.constant 0 : i32
    %c0_i32_0 = arith.constant 0 : i32
    %c0_i32_1 = arith.constant 0 : i32
    return %c0_i32, %c0_i32_0 : i32, i32
  }
  func.func @transform_3(%arg0: i32) -> (i32, i32) {
    %c0_i32 = arith.constant 0 : i32
    %c0_i32_0 = arith.constant 0 : i32
    %c0_i32_1 = arith.constant 0 : i32
    return %c0_i32, %c0_i32_0 : i32, i32
  }
  func.func @transform_4(%arg0: i32) -> (i32, i32) {
    %c0_i32 = arith.constant 0 : i32
    %c0_i32_0 = arith.constant 0 : i32
    %c0_i32_1 = arith.constant 0 : i32
    return %c0_i32, %c0_i32_0 : i32, i32
  }
  func.func @transform_5(%arg0: i32) -> (i32, i32) {
    %c0_i32 = arith.constant 0 : i32
    %c0_i32_0 = arith.constant 0 : i32
    %c0_i32_1 = arith.constant 0 : i32
    return %c0_i32, %c0_i32_0 : i32, i32
  }
  func.func @transform_6(%arg0: i32) -> (i32, i32) {
    %c0_i32 = arith.constant 0 : i32
    %c0_i32_0 = arith.constant 0 : i32
    %c0_i32_1 = arith.constant 0 : i32
    return %c0_i32, %c0_i32_0 : i32, i32
  }
  func.func @transform_7(%arg0: i32) -> (i32, i32) {
    %c0_i32 = arith.constant 0 : i32
    %c0_i32_0 = arith.constant 0 : i32
    return %arg0, %c0_i32 : i32, i32
  }
}

</mosaic_0001>

<bundles_post_ra>
// kernel: tpu_custom_call.1
= control target key start
LH: loop header
LB: loop body
LE: loop exit
PB: predicated region body
PF: predicated region fallthrough
CT: control target
= control target key end

     0   :  { %12 = vsyncpa [#allocation3], 0  ;;  %s536_s0 = inlined_call_operand.vmem [shape: f32[8,26], index: 0, kind: input, shape index: {}]   ;;  %s537_s1 = inlined_call_operand.hbm [shape: bf16[26,64], index: 1, kind: input, shape index: {}]   ;;  %s538_s2 = inlined_call_operand.vmem [shape: f32[1,64], index: 2, kind: input, shape index: {}]   ;;  %s539_s3 = inlined_call_operand.vmem [shape: bf16[64,64], index: 3, kind: input, shape index: {}]   ;;  %s540_s4 = inlined_call_operand.vmem [shape: f32[1,64], index: 4, kind: input, shape index: {}]   ;;  %s541_s5 = inlined_call_operand.vmem [shape: bf16[64,8], index: 5, kind: input, shape index: {}]   ;;  %s542_s6 = inlined_call_operand.vmem [shape: f32[1,8], index: 6, kind: input, shape index: {}]   ;;  %s543_s7 = inlined_call_operand.hbm [shape: f32[8,8], index: 7, kind: output, shape index: {}]  }
   0x1   :  { %13 = vsyncpa [#allocation4], 0  ;;  %s425_s24 = smov [#allocation2]   ;;  %s377_s28 = scalar_lea.hbm %s537_s1, 256 }
   0x2   :  { %s21_s25 = sshll.u32 %s425_s24, 4  ;;  %p378_p0 = scmp.ne.s32.totalorder %s537_s1, %s377_s28  ;;  %s22_s25 = int_to_ptr.vmem [resolvable:$true] %s21_s25 }
   0x3   :  { %p381_p1 = scmp.lt.u32.totalorder %s377_s28, %s537_s1 }
   0x5   :  { %p383_p2 = pnand %p381_p1, %p378_p0 }
   0x7   :  { %386 = shalt.err (!%p383_p2)
}
   0x8   :  { %s387_s10 = scalar_lea.vmem %s22_s25, 256  ;;  %p392_p4 = scmp.lt.s32.totalorder %s22_s25, %s22_s25 }
   0x9   :  { %p388_p3 = scmp.ne.s32.totalorder %s22_s25, %s387_s10  ;;  %p393_p5 = scmp.lt.s32.totalorder %s387_s10, %s387_s10 }
   0xb   :  { %p394_p6 = por %p393_p5, %p392_p4 }
   0xd   :  { %p395_p7 = pnand %p394_p6, %p388_p3 }
   0xf   :  { %398 = shalt.err (!%p395_p7)
}
  0x10   :  { %s426_s11 = smov 64   ;;  %s427_s12 = smov 4  }
  0x11   :  { %27 = dma.hbm_to_vmem [thread:$0]  %s537_s1, 256, %s22_s25, [#allocation3], %s426_s11, %s426_s11, %s427_s12  }
  0x12   :  { %421 = dma.done.wait [#allocation3], 256  }
  0x13   :  { %422 = vsyncadd [#allocation3], 4294967040  ;;  %v428_v0 = vmov 0.0   ;;  %vm429_vm0 = vmmov 0   ;;  %v367_v1 = vld [vmem:[#allocation2] sm:$0xff]   ;;  %vm70_vm1 = vcmask 1044480  }
  0x14   :  { %329 = vmatprep.subr.bf16.mxu0 %v428_v0  ;;  %333 = vmatprep.mubr.msk.bf16.mxu0 %vm429_vm0, %v428_v0  ;;  %v368_v2 = vld [vmem:[#allocation2 + $0x8] sm:$0x1f]   ;;  %v42_v3 = vld [vmem:[%s536_s0] sm:$0xff]  ;;  %vm66_vm2 = vcmask 211968   ;;  %v371_v8 = vld [vmem:[%s539_s3 + $0x10] sm:$0xff]   ;;  %vm155_vm3 = vcmask 523264  }
  0x15   :  { %337 = vmatprep.subr.bf16.mxu1 %v428_v0  ;;  %345 = vmatprep.mubr.msk.bf16.mxu1 %vm429_vm0, %v428_v0  ;;  %v72_v4 = vsel %vm70_vm1, %v368_v2, 0  ;;  %v369_v5 = vld [vmem:[%s539_s3] sm:$0xff]   ;;  %v370_v6 = vld [vmem:[%s539_s3 + $0x8] sm:$0xff]   ;;  %v43_v7 = vpack.c.bf16 %v42_v3, %v42_v3  ;;  %v372_v9 = vld [vmem:[%s539_s3 + $0x18] sm:$0xff]   ;;  %s430_s12 = smov [#allocation5]   ;;  %vm283_vm4 = vcmask 64512  }
  0x16   :  { %330 = vmatpush3.bf16.msra.mxu0 %v367_v1  ;;  %338 = vmatpush3.bf16.msra.mxu1 %v369_v5  ;;  %v373_v10 = vld [vmem:[%s541_s5] sm:$0xff]   ;;  %v374_v11 = vld [vmem:[%s541_s5 + $0x8] sm:$0xff]   ;;  %v375_v20 = vld [vmem:[%s541_s5 + $0x10] sm:$0xff]  }
  0x17   :  { %331 = vmatprep.subr.bf16.mxu0 %v428_v0  ;;  %339 = vmatprep.subr.bf16.mxu1 %v428_v0  ;;  %v300_v12 = vld [vmem:[%s538_s2] ss:$0 sm:$0xff]  ;;  %v376_v21 = vld [vmem:[%s541_s5 + $0x18] sm:$0xff]   ;;  %s291_s5 = sshll.u32 %s430_s12, 4  ;;  %s292_s5 = int_to_ptr.vmem [resolvable:$true] %s291_s5 }
  0x18   :  { %v304_v22 = vld [vmem:[%s540_s4] ss:$0 sm:$0xff]  ;;  %s399_s4 = scalar_lea.vmem %s292_s5, 128  ;;  %p404_p9 = scmp.lt.s32.totalorder %s292_s5, %s292_s5 }
  0x19   :  { %v310_v30 = vld [vmem:[%s542_s6] ss:$0 sm:$0xff]  ;;  %p400_p8 = scmp.ne.s32.totalorder %s292_s5, %s399_s4  ;;  %p405_p10 = scmp.lt.s32.totalorder %s399_s4, %s399_s4 }
  0x1a   :  { %332 = vmatpush3.bf16.msra.mxu0 %v72_v4  ;;  %340 = vmatpush3.bf16.msra.mxu1 %v370_v6 }
  0x1b   :  { %349 = vmatprep.subr.bf16.mxu0 %v428_v0  ;;  %341 = vmatprep.subr.bf16.mxu1 %v428_v0  ;;  %p406_p11 = por %p405_p10, %p404_p9 }
  0x1d   :  { %334 = vmatmul.mubr.msk.bf16.vlgmr.msra.gmra.mrb[0].mxu0 %vm66_vm2, %v43_v7  ;;  %p407_p12 = pnand %p406_p11, %p400_p8 }
  0x1e   :  { %357 = vmatprep.mubr.msk.bf16.mxu0 %vm429_vm0, %v428_v0  ;;  %342 = vmatpush3.bf16.msra.mxu1 %v371_v8 }
  0x1f   :  { %343 = vmatprep.subr.bf16.mxu1 %v428_v0  ;;  %350 = vmatpush3.bf16.msra.mxu0 %v373_v10 }
  0x20   :  { %351 = vmatprep.subr.bf16.mxu0 %v428_v0 }
  0x22   :  { %344 = vmatpush3.bf16.msra.mxu1 %v372_v9 }
  0x23   :  { %352 = vmatpush3.bf16.msra.mxu0 %v374_v11 }
  0x24   :  { %353 = vmatprep.subr.bf16.mxu0 %v428_v0 }
  0x27   :  { %354 = vmatpush3.bf16.msra.mxu0 %v375_v20 }
  0x28   :  { %355 = vmatprep.subr.bf16.mxu0 %v428_v0 }
  0x2b   :  { %356 = vmatpush3.bf16.msra.mxu0 %v376_v21 }
  0xf0   :  { %v108_v13 = vpop.f32.mrb[0].mxu0 }
  0xf1   :  { %v109_v14 = vadd.f32 %v300_v12, %v108_v13  ;;  %v335_v15 = vpop.f32.mrb[1].mxu0 }
  0xf2   :  { %v111_v16 = vpop.f32.mrb[2].mxu0 }
  0xf3   :  { %v114_v17 = vmax.f32 %v109_v14, 0.0  ;;  %v336_v18 = vpop.f32.mrb[3].mxu0 }
  0xf5   :  { %v115_v19 = vpack.c.bf16 %v114_v17, %v114_v17 }
  0xf7   :  { %346 = vmatmul.mubr.msk.bf16.vlgmr.msra.gmra.mrb[0].mxu1 %vm155_vm3, %v115_v19 }
 0x1ca   :  { %v193_v23 = vpop.f32.mrb[0].mxu1 }
 0x1cb   :  { %v194_v24 = vadd.f32 %v304_v22, %v193_v23  ;;  %v347_v25 = vpop.f32.mrb[1].mxu1 }
 0x1cc   :  { %v196_v26 = vpop.f32.mrb[2].mxu1 }
 0x1cd   :  { %v199_v27 = vmax.f32 %v194_v24, 0.0  ;;  %v348_v28 = vpop.f32.mrb[3].mxu1 }
 0x1cf   :  { %v200_v29 = vpack.c.bf16 %v199_v27, %v199_v27 }
 0x1d1   :  { %358 = vmatmul.mubr.msk.bf16.vlgmr.msra.gmra.mrb[4].mxu0 %vm155_vm3, %v200_v29 }
 0x2a4   :  { %v277_v31 = vpop.f32.mrb[4].mxu0 }
 0x2a5   :  { %v278_v32 = vadd.f32 %v310_v30, %v277_v31  ;;  %v359_v33 = vpop.f32.mrb[5].mxu0 }
 0x2a6   :  { %v280_v34 = vpop.f32.mrb[6].mxu0 }
 0x2a7   :  { %v360_v35 = vpop.f32.mrb[7].mxu0  ;;  %284 = vst.msk [vmem:[#allocation5] sm:$0xff] %vm283_vm4, %v278_v32 }
 0x2a8   :  { %410 = shalt.err (!%p407_p12)
}
 0x2a9   :  { %s411_s6 = scalar_lea.hbm %s543_s7, 128 }
 0x2aa   :  { %p412_p13 = scmp.ne.s32.totalorder %s543_s7, %s411_s6  ;;  %p415_p0 = scmp.lt.u32.totalorder %s411_s6, %s543_s7 }
 0x2ac   :  { %p417_p1 = pnand %p415_p0, %p412_p13 }
 0x2ae   :  { %420 = shalt.err (!%p417_p1)
}
 0x2af   :  { %294 = dma.vmem_to_hbm [thread:$0]  %s292_s5, 128, %s543_s7, [#allocation4]  }
 0x2b0   :  { %423 = dma.done.wait [#allocation4], 128  }
 0x2b1   :  { %424 = vsyncadd [#allocation4], 4294967168 }
 0x2b2   :  { %298 = vsyncpa [#allocation3], 1 }
 0x2b3   :  { %299 = vsyncpa [#allocation4], 1 }

</bundles_post_ra>
